<compile_context>
chip_gen: v5e
topology: v5e:2x2
jax: 0.10.0
libtpu: 0.0.40
codegen_flags: <defaults>
</compile_context>

<pallas_src>
import jax
import jax.numpy as jnp
from jax.experimental import pallas as pl
from jax.experimental.pallas import tpu as pltpu


def _rope_kernel(inv_freq_ref, pos_ref, cos_ref, sin_ref):
    # inv_freq_ref: (1, half)    float32   (same block every grid step)
    # pos_ref:      (TILE, 1)    int32     (sublane-oriented flattened positions)
    # cos_ref/sin_ref: (TILE, dim)
    half = inv_freq_ref.shape[1]

    pos = pos_ref[...].astype(jnp.float32)        # (TILE, 1)
    inv = inv_freq_ref[...]                       # (1, half)

    # Outer product via broadcasting: freqs[r, k] = pos[r] * inv_freq[k]
    freqs = pos * inv                             # (TILE, half)

    # Transcendentals on the half-width tensor only; cast to output dtype once.
    c = jnp.cos(freqs).astype(cos_ref.dtype)      # (TILE, half)
    s = jnp.sin(freqs).astype(sin_ref.dtype)      # (TILE, half)

    # emb = concat(freqs, freqs) => both output halves are identical.
    if half % 128 == 0:
        # Lane-aligned half stores: unmasked vst already.
        cos_ref[:, :half] = c
        cos_ref[:, half:] = c
        sin_ref[:, :half] = s
        sin_ref[:, half:] = s
    else:
        # half < 128 (e.g. head_dim 64/32): sub-lane-width slice stores would be
        # masked; build the full-width tile in vregs and store lane-dense once.
        cos_ref[...] = jnp.concatenate([c, c], axis=-1)
        sin_ref[...] = jnp.concatenate([s, s], axis=-1)


def _choose_tile(n_rows):
    # 1024 rows amortizes per-grid-step overhead (<10% even on v7x HBM) while the
    # per-step VMEM stays ~4 MiB double-buffered. If the whole problem fits in
    # one tile, use the full extent (satisfies the "block equals full dim" rule
    # even when n_rows % 8 != 0).
    TARGET = 1024
    return n_rows if n_rows <= TARGET else TARGET


def gemma_rotary_embedding(x, position_ids, dim, base=10000.0):
    """Pallas implementation of GemmaRotaryEmbedding.forward.

    x:            any array; only its dtype is used (like the PyTorch module).
    position_ids: [B, S] integer positions (float32-exact up to 2^24, same as the
                  PyTorch float path).
    Returns (cos, sin), each [B, S, dim], dtype == x.dtype.
    """
    assert dim % 2 == 0, "GemmaRotaryEmbedding requires an even head dim"
    B, S = position_ids.shape
    half = dim // 2
    N = B * S
    tile = _choose_tile(N)
    num_tiles = pl.cdiv(N, tile)

    # Registered-buffer setup, same formula as __init__ (tiny, computed once).
    inv_freq = 1.0 / (base ** (jnp.arange(0, dim, 2, dtype=jnp.float32) / dim))
    inv_freq = inv_freq.reshape(1, half)                 # (1, half) 2D layout

    # Flattened, sublane-oriented positions; int32 -> f32 cast happens in-kernel.
    pos = position_ids.astype(jnp.int32).reshape(N, 1)

    out_dtype = x.dtype
    out_bytes = jnp.dtype(out_dtype).itemsize
    out_shape = (
        jax.ShapeDtypeStruct((N, dim), out_dtype),
        jax.ShapeDtypeStruct((N, dim), out_dtype),
    )

    cost = pl.CostEstimate(
        flops=int(N * half),                              # outer-product muls
        transcendentals=int(2 * N * half),                # sin + cos
        bytes_accessed=int(2 * N * dim * out_bytes + N * 4 + half * 4),
    )

    grid_spec = pltpu.PrefetchScalarGridSpec(
        num_scalar_prefetch=0,
        grid=(num_tiles,),
        in_specs=[
            pl.BlockSpec((1, half), lambda t: (0, 0)),      # inv_freq (shared)
            pl.BlockSpec((tile, 1), lambda t: (t, 0)),      # positions tile
        ],
        out_specs=[
            pl.BlockSpec((tile, dim), lambda t: (t, 0)),    # cos
            pl.BlockSpec((tile, dim), lambda t: (t, 0)),    # sin
        ],
    )

    cos, sin = pl.pallas_call(
        _rope_kernel,
        out_shape=out_shape,
        grid_spec=grid_spec,
        compiler_params=pltpu.CompilerParams(
            # Single independent axis: v7x's two TensorCores split the row tiles
            # for any (B, S) split, including B=1 prefill and S=1 decode.
            dimension_semantics=("parallel",),
        ),
        cost_estimate=cost,
    )(inv_freq, pos)

    return cos.reshape(B, S, dim), sin.reshape(B, S, dim)


if __name__ == "__main__":
    key = jax.random.PRNGKey(0)
    B, S, dim = 2, 8, 32

    # x only contributes its dtype in the reference module.
    x = jax.random.normal(key, (B, S, dim), dtype=jnp.float32)
    position_ids = jnp.broadcast_to(jnp.arange(S, dtype=jnp.int32)[None, :], (B, S))

    cos, sin = gemma_rotary_embedding(x, position_ids, dim)
    jax.block_until_ready((cos, sin))

    # Reference check (plain JAX) for correctness.
    inv_freq = 1.0 / (10000.0 ** (jnp.arange(0, dim, 2, dtype=jnp.float32) / dim))
    freqs_ref = position_ids.astype(jnp.float32)[:, :, None] * inv_freq[None, None, :]
    emb_ref = jnp.concatenate([freqs_ref, freqs_ref], axis=-1)
    assert jnp.allclose(cos, jnp.cos(emb_ref).astype(x.dtype), atol=1e-5)
    assert jnp.allclose(sin, jnp.sin(emb_ref).astype(x.dtype), atol=1e-5)
    assert cos.shape == (B, S, dim) and sin.shape == (B, S, dim)
    assert cos.dtype == x.dtype and sin.dtype == x.dtype

    print("KERNEL_OK")
</pallas_src>

<mosaic_0001>
module attributes {stable_mosaic.version = 11 : i64} {
  func.func @_rope_kernel(%arg0: i32, %arg1: memref<1x16xf32, #tpu.memory_space<vmem>>, %arg2: memref<16x1xi32, #tpu.memory_space<vmem>>, %arg3: memref<16x32xf32, #tpu.memory_space<vmem>>, %arg4: memref<16x32xf32, #tpu.memory_space<vmem>>) attributes {dimension_semantics = [#tpu.dimension_semantics<parallel>], iteration_bounds = array<i64: 1>, scalar_prefetch = 0 : i64, scratch_operands = 0 : i64, tpu.core_type = #tpu.core_type<tc>, window_params = [{pipeline_mode = #tpu.pipeline_mode<synchronous>, transform_indices = @transform_0, window_bounds = array<i64: 1, 16>}, {transform_indices = @transform_1, window_bounds = array<i64: 16, 1>}, {transform_indices = @transform_2, window_bounds = array<i64: 16, 32>}, {transform_indices = @transform_3, window_bounds = array<i64: 16, 32>}]} {
    %c0 = arith.constant 0 : index
    %c0_0 = arith.constant 0 : index
    %0 = vector.load %arg2[%c0, %c0_0] : memref<16x1xi32, #tpu.memory_space<vmem>>, vector<16x1xi32>
    %1 = arith.sitofp %0 : vector<16x1xi32> to vector<16x1xf32>
    %c0_1 = arith.constant 0 : index
    %c0_2 = arith.constant 0 : index
    %2 = vector.load %arg1[%c0_1, %c0_2] : memref<1x16xf32, #tpu.memory_space<vmem>>, vector<1x16xf32>
    %3 = vector.broadcast %1 : vector<16x1xf32> to vector<16x16xf32>
    %4 = vector.broadcast %2 : vector<1x16xf32> to vector<16x16xf32>
    %5 = arith.mulf %3, %4 : vector<16x16xf32>
    %6 = math.cos %5 : vector<16x16xf32>
    %7 = math.sin %5 : vector<16x16xf32>
    %8 = tpu.concatenate %6, %6 in 1 : vector<16x16xf32>, vector<16x16xf32> -> vector<16x32xf32>
    %c0_3 = arith.constant 0 : index
    %c0_4 = arith.constant 0 : index
    %9 = vector.load %arg3[%c0_3, %c0_4] : memref<16x32xf32, #tpu.memory_space<vmem>>, vector<16x32xf32>
    tpu.vector_store %arg3[%c0_3, %c0_4], %8 {strides = array<i32>} : memref<16x32xf32, #tpu.memory_space<vmem>>, vector<16x32xf32>,
    %10 = tpu.concatenate %7, %7 in 1 : vector<16x16xf32>, vector<16x16xf32> -> vector<16x32xf32>
    %c0_5 = arith.constant 0 : index
    %c0_6 = arith.constant 0 : index
    %11 = vector.load %arg4[%c0_5, %c0_6] : memref<16x32xf32, #tpu.memory_space<vmem>>, vector<16x32xf32>
    tpu.vector_store %arg4[%c0_5, %c0_6], %10 {strides = array<i32>} : memref<16x32xf32, #tpu.memory_space<vmem>>, vector<16x32xf32>,
    return
  }
  func.func @transform_0(%arg0: i32) -> (i32, i32) {
    %c0_i32 = arith.constant 0 : i32
    %c0_i32_0 = arith.constant 0 : i32
    %c0_i32_1 = arith.constant 0 : i32
    return %c0_i32, %c0_i32_0 : i32, i32
  }
  func.func @transform_1(%arg0: i32) -> (i32, i32) {
    %c0_i32 = arith.constant 0 : i32
    %c0_i32_0 = arith.constant 0 : i32
    return %arg0, %c0_i32 : i32, i32
  }
  func.func @transform_2(%arg0: i32) -> (i32, i32) {
    %c0_i32 = arith.constant 0 : i32
    %c0_i32_0 = arith.constant 0 : i32
    return %arg0, %c0_i32 : i32, i32
  }
  func.func @transform_3(%arg0: i32) -> (i32, i32) {
    %c0_i32 = arith.constant 0 : i32
    %c0_i32_0 = arith.constant 0 : i32
    return %arg0, %c0_i32 : i32, i32
  }
}

</mosaic_0001>

<bundles_post_ra>
// kernel: tpu_custom_call.1
= control target key start
LH: loop header
LB: loop body
LE: loop exit
PB: predicated region body
PF: predicated region fallthrough
CT: control target
= control target key end

     0   :  { %9 = vsyncpa [#allocation3], 0  ;;  %v793_v1 = vmov 0   ;;  %s1010_s0 = inlined_call_operand.vmem [shape: f32[1,16], index: 0, kind: input, shape index: {}]   ;;  %s1011_s1 = inlined_call_operand.vmem [shape: s32[16,1], index: 1, kind: input, shape index: {}]   ;;  %s1012_s2 = inlined_call_operand.hbm [shape: f32[16,32], index: 2, kind: output, shape index: {0}]   ;;  %s1013_s3 = inlined_call_operand.hbm [shape: f32[16,32], index: 3, kind: output, shape index: {1}]  }
   0x1   :  { %v15_v0 = vld [vmem:[%s1011_s1] sm:$0xff]  ;;  %739 = vset.pattern.permute.xlu0 %v793_v1 }
   0x2   :  { %v17_v2 = vcvt.s32.f32 %v15_v0 }
   0x3   :  { %10 = vsyncpa [#allocation5], 0  ;;  %v16_v3 = vld [vmem:[%s1011_s1 + $0x8] sm:$0xff]  ;;  %v740_v5 = vld [vmem:[%s1010_s0] ss:$0 sm:$0xff]  ;;  %s800_s0 = smov 16  }
   0x4   :  { %22 = vperm.xlu0 %739, %v17_v2   ;;  %v18_v4 = vcvt.s32.f32 %v16_v3  ;;  %v794_v23 = vmov 2102212464   ;;  %v795_v27 = vmov 920167782   ;;  %v796_v30 = vmov 1326507024  }
   0x5   :  { %v797_v32 = vmov 2475754826   ;;  %v798_v37 = vmov 683565275   ;;  %v799_v41 = vmov 2131351028  }
   0x6   :  { %s801_s1 = smov [#allocation4]   ;;  %s698_s21 = sshll.u32 %s1013_s3, 4  ;;  %s699_s21 = int_to_ptr.hbm [resolvable:$true] %s698_s21 }
   0x7   :  { %s696_s18 = sshll.u32 %s801_s1, 4  ;;  %s802_s22 = smov 128   ;;  %s697_s18 = int_to_ptr.vmem [resolvable:$true] %s696_s18 }
   0x8   :  { %s803_s23 = smov 8   ;;  %s804_s24 = smov [#allocation2]  }
   0x9   :  { %s683_s25 = sshll.u32 %s804_s24, 4  ;;  %s685_s3 = sshll.u32 %s1012_s2, 4  ;;  %s684_s25 = int_to_ptr.vmem [resolvable:$true] %s683_s25  ;;  %s686_s3 = int_to_ptr.hbm [resolvable:$true] %s685_s3 }
   0xc   :  { %27 = vperm.xlu0 %739, %v18_v4  }
  0x76   :  { %v23_v6 = vpop.permute.xlu0 %22 }
  0x77   :  { %v835_v7 = vmul.f32 %v740_v5, %v23_v6 }
  0x79   :  { %v38_v8 = vand.u32 2139095040, %v835_v7  ;;  %v35_v12 = vand.u32 2147483647, %v835_v7 }
  0x7b   :  { %v39_v9 = vshrl.u32 %v38_v8, 23  ;;  %v42_v18 = vand.u32 8388607, %v35_v12 }
  0x7d   :  { %v715_v10 = vadd.s32 4294967169, %v39_v9  ;;  %v43_v26 = vor.u32 8388608, %v42_v18 }
  0x7e   :  { %v28_v11 = vpop.permute.xlu0 %27 }
  0x7f   :  { %v45_v13 = vadd.s32 1, %v715_v10  ;;  %v839_v14 = vmul.f32 %v740_v5, %v28_v11  ;;  %v850_v44 = vshll.u32 %v43_v26, 8 }
  0x81   :  { %vm46_vm0 = vcmp.gt.s32.totalorder %v45_v13, 0  ;;  %v189_v15 = vand.u32 2147483647, %v839_v14  ;;  %v192_v16 = vand.u32 2139095040, %v839_v14 }
  0x82   :  { %v47_v17 = vsel %vm46_vm0, %v45_v13, 0 }
  0x83   :  { %v49_v19 = vand.u32 31, %v47_v17  ;;  %v193_v20 = vshrl.u32 %v192_v16, 23  ;;  %v196_v21 = vand.u32 8388607, %v189_v15  ;;  %v847_v34 = vshrl.u32 %v47_v17, 5 }
  0x85   :  { %v50_v22 = vsub.s32 32, %v49_v19  ;;  %v61_v24 = vshll.u32 %v794_v23, %v49_v19  ;;  %v718_v25 = vadd.s32 4294967169, %v193_v20  ;;  %v64_v29 = vshll.u32 %v795_v27, %v49_v19 }
  0x86   :  { %v197_v35 = vor.u32 8388608, %v196_v21  ;;  %v52_v38 = vshll.u32 %v798_v37, %v49_v19  ;;  %v55_v47 = vshll.u32 %v797_v32, %v49_v19  ;;  %v58_v48 = vshll.u32 %v799_v41, %v49_v19 }
  0x87   :  { %v62_v28 = vshrl.u32 %v795_v27, %v50_v22  ;;  %v65_v31 = vshrl.u32 %v796_v30, %v50_v22  ;;  %v53_v33 = vshrl.u32 %v797_v32, %v50_v22  ;;  %v199_v36 = vadd.s32 1, %v718_v25 }
  0x88   :  { %v56_v42 = vshrl.u32 %v799_v41, %v50_v22  ;;  %v59_v43 = vshrl.u32 %v794_v23, %v50_v22  ;;  %vm70_vm2 = vcmp.lt.s32.totalorder %v847_v34, 4  ;;  %v853_v50 = vshll.u32 %v197_v35, 8 }
  0x89   :  { %v63_v39 = vor.u32 %v62_v28, %v61_v24  ;;  %v66_v40 = vor.u32 %v65_v31, %v64_v29  ;;  %vm200_vm1 = vcmp.gt.s32.totalorder %v199_v36, 0  ;;  %v54_v46 = vor.u32 %v53_v33, %v52_v38 }
  0x8a   :  { %v201_v45 = vsel %vm200_vm1, %v199_v36, 0  ;;  %v51_v51 = vshrl.u32 %v798_v37, %v50_v22  ;;  %v57_v54 = vor.u32 %v56_v42, %v55_v47  ;;  %v60_v55 = vor.u32 %v59_v43, %v58_v48 }
  0x8b   :  { %v203_v49 = vand.u32 31, %v201_v45  ;;  %v76_v52 = vsel %vm70_vm2, %v63_v39, 920167782  ;;  %v80_v53 = vsel %vm70_vm2, %v66_v40, 1326507024  ;;  %v860_v56 = vshrl.u32 %v201_v45, 5 }
  0x8c   :  { %vm67_vm3 = vcmp.lt.s32.totalorder %v847_v34, 1  ;;  %vm68_vm4 = vcmp.lt.s32.totalorder %v847_v34, 2  ;;  %vm69_vm5 = vcmp.lt.s32.totalorder %v847_v34, 3  ;;  %v72_v19 = vsel %vm70_vm2, %v60_v55, 2102212464 }
  0x8d   :  { %v862_v57 = vsub.s32 32, %v203_v49  ;;  %v206_v58 = vshll.u32 %v798_v37, %v203_v49  ;;  %v209_v59 = vshll.u32 %v797_v32, %v203_v49  ;;  %v71_v60 = vsel %vm67_vm3, %v51_v51, %v54_v46 }
  0x8e   :  { %v212_v63 = vshll.u32 %v799_v41, %v203_v49  ;;  %v215_v2 = vshll.u32 %v794_v23, %v203_v49  ;;  %v218_v4 = vshll.u32 %v795_v27, %v203_v49  ;;  %v75_v10 = vsel %vm67_vm3, %v54_v46, %v57_v54 }
  0x8f   :  { %v207_v61 = vshrl.u32 %v797_v32, %v862_v57  ;;  %v210_v62 = vshrl.u32 %v799_v41, %v862_v57  ;;  %v213_v0 = vshrl.u32 %v794_v23, %v862_v57  ;;  %v216_v3 = vshrl.u32 %v795_v27, %v862_v57 }
  0x90   :  { %v219_v5 = vshrl.u32 %v796_v30, %v862_v57  ;;  %vm221_vm6 = vcmp.lt.s32.totalorder %v860_v56, 1  ;;  %v77_v16 = vsel %vm69_vm5, %v60_v55, %v76_v52  ;;  %vm224_vm7 = vcmp.lt.s32.totalorder %v860_v56, 4 }
  0x91   :  { %v875_v6 = vor.u32 %v207_v61, %v206_v58  ;;  %v877_v8 = vor.u32 %v210_v62, %v209_v59  ;;  %v879_v9 = vor.u32 %v213_v0, %v212_v63  ;;  %v217_v11 = vor.u32 %v216_v3, %v215_v2 }
  0x92   :  { %v220_v13 = vor.u32 %v219_v5, %v218_v4  ;;  %vm222_vm8 = vcmp.lt.s32.totalorder %v860_v56, 2  ;;  %vm223_vm9 = vcmp.lt.s32.totalorder %v860_v56, 3  ;;  %v78_v24 = vsel %vm68_vm4, %v75_v10, %v77_v16 }
  0x93   :  { %v229_v17 = vsel %vm221_vm6, %v875_v6, %v877_v8  ;;  %v233_v18 = vsel %vm221_vm6, %v877_v8, %v879_v9  ;;  %v230_v20 = vsel %vm224_vm7, %v217_v11, 920167782  ;;  %v79_v25 = vsel %vm67_vm3, %v57_v54, %v60_v55 }
  0x94   :  { %v234_v21 = vsel %vm224_vm7, %v220_v13, 1326507024  ;;  %v231_v22 = vsel %vm223_vm9, %v879_v9, %v230_v20  ;;  %v73_v28 = vsel %vm69_vm5, %v57_v54, %v72_v19  ;;  %v81_v29 = vsel %vm69_vm5, %v63_v39, %v80_v53 }
  0x95   :  { %v235_v23 = vsel %vm223_vm9, %v217_v11, %v234_v21  ;;  %v232_v26 = vsel %vm222_vm8, %v229_v17, %v231_v22  ;;  %v238_v30 = vand.u32 65535, %v853_v50  ;;  %v84_v33 = vand.u32 65535, %v850_v44 }
  0x96   :  { %v236_v27 = vsel %vm222_vm8, %v233_v18, %v235_v23  ;;  %v263_v35 = vshrl.u32 %v232_v26, 16  ;;  %v82_v36 = vsel %vm68_vm4, %v79_v25, %v81_v29  ;;  %v108_v38 = vand.u32 65535, %v78_v24 }
  0x97   :  { %v240_v31 = vand.u32 65535, %v236_v27  ;;  %v241_v32 = vshrl.u32 %v236_v27, 16  ;;  %v109_v40 = vshrl.u32 %v78_v24, 16  ;;  %v239_v41 = vshrl.u32 %v853_v50, 16 }
  0x98   :  { %v929_v43 = vsel %vm68_vm4, %v71_v60, %v73_v28  ;;  %v85_v39 = vshrl.u32 %v850_v44, 16  ;;  %v262_v46 = vand.u32 65535, %v232_v26  ;;  %v86_v47 = vand.u32 65535, %v82_v36 }
  0x99   :  { %v925_v42 = vmul.u32 %v241_v32, %v238_v30  ;;  %v242_v45 = vmul.u32 %v240_v31, %v238_v30  ;;  %v87_v48 = vshrl.u32 %v82_v36, 16  ;;  %v245_v49 = vmul.u32 %v241_v32, %v239_v41 }
  0x9a   :  { %v111_v52 = vmul.u32 %v109_v40, %v84_v33  ;;  %v112_v53 = vmul.u32 %v108_v38, %v85_v39  ;;  %v933_v54 = vmul.u32 %v263_v35, %v238_v30  ;;  %v267_v55 = vmul.u32 %v263_v35, %v239_v41 }
  0x9b   :  { %v246_v51 = vshll.u32 %v925_v42, 16  ;;  %v89_v58 = vmul.u32 %v87_v48, %v84_v33  ;;  %v90_v59 = vmul.u32 %v86_v47, %v85_v39  ;;  %v88_v61 = vmul.u32 %v86_v47, %v84_v33 }
  0x9c   :  { %v110_v34 = vmul.u32 %v108_v38, %v84_v33  ;;  %v113_v60 = vmul.u32 %v109_v40, %v85_v39  ;;  %v114_v62 = vshll.u32 %v111_v52, 16  ;;  %v91_v2 = vmul.u32 %v87_v48, %v85_v39 }
  0x9d   :  { %vm935_vm10 = vc.u32 %v242_v45, %v246_v51  ;;  %v252_v0 = vadd.s32 %v246_v51, %v242_v45  ;;  %v92_v3 = vshll.u32 %v89_v58, 16  ;;  %v94_v4 = vshll.u32 %v90_v59, 16 }
  0x9e   :  { %v116_v5 = vshll.u32 %v112_v53, 16  ;;  %vm118_vm11 = vc.u32 %v110_v34, %v114_v62  ;;  %v120_v10 = vadd.s32 %v114_v62, %v110_v34  ;;  %v244_v16 = vmul.u32 %v240_v31, %v239_v41 }
  0x9f   :  { %vm96_vm12 = vc.u32 %v88_v61, %v92_v3  ;;  %v98_v11 = vadd.s32 %v92_v3, %v88_v61  ;;  %v119_v13 = vsel %vm118_vm11, 1, %v793_v1  ;;  %v115_v18 = vshrl.u32 %v111_v52, 16 }
  0xa0   :  { %v97_v17 = vsel %vm96_vm12, 1, %v793_v1  ;;  %v121_v19 = vadd.s32 %v119_v13, %v113_v60  ;;  %vm122_vm13 = vc.u32 %v120_v10, %v116_v5  ;;  %v93_v20 = vshrl.u32 %v89_v58, 16 }
  0xa1   :  { %v99_v21 = vadd.s32 %v97_v17, %v91_v2  ;;  %vm100_vm14 = vc.u32 %v98_v11, %v94_v4  ;;  %v123_v22 = vsel %vm122_vm13, 1, %v793_v1  ;;  %v117_v24 = vshrl.u32 %v112_v53, 16 }
  0xa2   :  { %v101_v23 = vsel %vm100_vm14, 1, %v793_v1  ;;  %v125_v25 = vadd.s32 %v123_v22, %v121_v19  ;;  %v248_v26 = vshll.u32 %v244_v16, 16  ;;  %v251_v28 = vsel %vm935_vm10, 1, %v793_v1 }
  0xa3   :  { %v103_v27 = vadd.s32 %v101_v23, %v99_v21  ;;  %v264_v29 = vmul.u32 %v262_v46, %v238_v30  ;;  %v266_v31 = vmul.u32 %v262_v46, %v239_v41  ;;  %v253_v33 = vadd.s32 %v251_v28, %v245_v49 }
  0xa4   :  { %v126_v32 = vadd.s32 %v125_v25, %v115_v18  ;;  %vm254_vm15 = vc.u32 %v252_v0, %v248_v26  ;;  %v268_v35 = vshll.u32 %v933_v54, 16  ;;  %v95_v36 = vshrl.u32 %v90_v59, 16 }
  0xa5   :  { %v104_v38 = vadd.s32 %v103_v27, %v93_v20  ;;  %v124_v40 = vadd.s32 %v120_v10, %v116_v5  ;;  %v255_v39 = vsel %vm254_vm15, 1, %v793_v1  ;;  %v247_v47 = vshrl.u32 %v925_v42, 16 }
  0xa6   :  { %v127_v45 = vadd.s32 %v126_v32, %v117_v24  ;;  %v257_v48 = vadd.s32 %v255_v39, %v253_v33  ;;  %vm272_vm0 = vc.u32 %v264_v29, %v268_v35  ;;  %v270_v52 = vshll.u32 %v266_v31, 16 }
  0xa7   :  { %v105_v51 = vadd.s32 %v104_v38, %v95_v36  ;;  %v273_v30 = vsel %vm272_vm0, 1, %v793_v1  ;;  %v274_v41 = vadd.s32 %v268_v35, %v264_v29  ;;  %v226_v58 = vsel %vm224_vm7, %v879_v9, 2102212464 }
  0xa8   :  { %v131_v46 = vadd.s32 1, %v127_v45  ;;  %v258_v49 = vadd.s32 %v257_v48, %v247_v47  ;;  %v275_v53 = vadd.s32 %v273_v30, %v267_v55  ;;  %v128_v59 = vmul.u32 %v850_v44, %v929_v43 }
  0xa9   :  { %vm130_vm1 = vc.u32 %v105_v51, %v124_v40  ;;  %vm276_vm2 = vc.u32 %v274_v41, %v270_v52  ;;  %v205_v42 = vshrl.u32 %v798_v37, %v862_v57  ;;  %v249_v34 = vshrl.u32 %v244_v16, 16 }
  0xaa   :  { %v132_v61 = vsel %vm130_vm1, %v131_v46, %v127_v45  ;;  %v277_v60 = vsel %vm276_vm2, 1, %v793_v1  ;;  %v269_v63 = vshrl.u32 %v933_v54, 16  ;;  %v227_v44 = vsel %vm223_vm9, %v877_v8, %v226_v58 }
  0xab   :  { %v133_v62 = vadd.s32 %v132_v61, %v128_v59  ;;  %v279_v55 = vadd.s32 %v277_v60, %v275_v53  ;;  %v225_v9 = vsel %vm221_vm6, %v205_v42, %v875_v6  ;;  %v259_v43 = vadd.s32 %v258_v49, %v249_v34 }
  0xac   :  { %v271_v2 = vshrl.u32 %v266_v31, 16  ;;  %v278_v57 = vadd.s32 %v274_v41, %v270_v52  ;;  %v228_v1 = vsel %vm222_vm8, %v225_v9, %v227_v44  ;;  %v129_v23 = vadd.s32 %v124_v40, %v105_v51 }
  0xad   :  { %v134_v0 = vadd.s32 536870912, %v133_v62  ;;  %v280_v37 = vadd.s32 %v279_v55, %v269_v63  ;;  %v282_v10 = vmul.u32 %v853_v50, %v228_v1  ;;  %vm37_vm8 = vcmp.lt.s32.totalorder %v835_v7, 0 }
  0xae   :  { %vm284_vm3 = vc.u32 %v259_v43, %v278_v57  ;;  %v283_v48 = vadd.s32 %v278_v57, %v259_v43  ;;  %vm36_vm9 = vcmp.le.f32.partialorder %v35_v12, 0.7853982  ;;  %vm191_vm10 = vcmp.lt.s32.totalorder %v839_v14, 0 }
  0xaf   :  { %v135_v3 = vshrl.u32 %v134_v0, 30  ;;  %v281_v4 = vadd.s32 %v280_v37, %v271_v2  ;;  %vm978_vm11 = vcmp.le.f32.partialorder %v189_v15, 0.7853982  ;;  %vm178_vm2 = vweird.f32 %v835_v7 }
  0xb1   :  { %v136_v54 = vshll.u32 %v135_v3, 30  ;;  %v285_v5 = vadd.s32 1, %v281_v4  ;;  %v159_v49 = vsub.s32 4, %v135_v3 }
  0xb3   :  { %v137_v6 = vsub.s32 %v133_v62, %v136_v54  ;;  %v286_v11 = vsel %vm284_vm3, %v285_v5, %v281_v4  ;;  %v160_v60 = vsel %vm37_vm8, %v159_v49, %v135_v3 }
  0xb4   :  { %v287_v13 = vadd.s32 %v286_v11, %v282_v10  ;;  %v162_v44 = vsel %vm36_vm9, 0, %v160_v60 }
  0xb5   :  { %vm138_vm4 = vcmp.lt.s32.totalorder %v137_v6, 0  ;;  %v139_v8 = vsub.s32 0, %v137_v6  ;;  %v487_v12 = vadd.s32 3, %v162_v44 }
  0xb6   :  { %v288_v16 = vadd.s32 536870912, %v287_v13 }
  0xb7   :  { %v140_v17 = vsel %vm138_vm4, %v139_v8, %v137_v6 }
  0xb8   :  { %v141_v18 = vclz %v140_v17  ;;  %v968_v19 = vshrl.u32 %v288_v16, 30  ;;  %v488_v16 = vand.u32 3, %v487_v12  ;;  %v179_v17 = vand.u32 3, %v162_v44 }
  0xba   :  { %v716_v20 = vadd.s32 4294967294, %v141_v18  ;;  %v290_v56 = vshll.u32 %v968_v19, 30  ;;  %v313_v10 = vsub.s32 4, %v968_v19  ;;  %vm180_vm12 = vcmp.lt.s32.totalorder %v179_v17, 2 }
  0xbb   :  { %vm181_vm13 = vcmp.eq.s32.totalorder %v179_v17, 0  ;;  %vm184_vm14 = vcmp.eq.s32.totalorder %v179_v17, 2  ;;  %vm489_vm15 = vcmp.lt.s32.totalorder %v488_v16, 2  ;;  %vm493_vm0 = vcmp.eq.s32.totalorder %v488_v16, 2 }
  0xbc   :  { %vm717_vm5 = vcmp.lt.s32.totalorder %v716_v20, 0  ;;  %v291_v21 = vsub.s32 %v287_v13, %v290_v56  ;;  %vm490_vm1 = vcmp.eq.s32.totalorder %v488_v16, 0 }
  0xbd   :  { %v144_v22 = vsel %vm717_vm5, 0, %v716_v20 }
  0xbe   :  { %v145_v24 = vsub.s32 32, %v144_v22  ;;  %v149_v25 = vsub.s32 4294967266, %v144_v22  ;;  %vm292_vm6 = vcmp.lt.s32.totalorder %v291_v21, 0  ;;  %v293_v50 = vsub.s32 0, %v291_v21 }
  0xbf   :  { %v146_v26 = vshll.u32 %v137_v6, %v144_v22 }
  0xc0   :  { %v147_v27 = vshrl.u32 %v129_v23, %v145_v24  ;;  %v150_v28 = vadd.s32 127, %v149_v25  ;;  %v294_v29 = vsel %vm292_vm6, %v293_v50, %v291_v21 }
  0xc1   :  { %v295_v33 = vclz %v294_v29 }
  0xc2   :  { %v148_v31 = vor.u32 %v147_v27, %v146_v26  ;;  %v151_v32 = vshll.u32 %v150_v28, 23 }
  0xc3   :  { %v719_v36 = vadd.s32 4294967294, %v295_v33 }
  0xc4   :  { %v152_v35 = vor.u32 4788187, %v151_v32  ;;  %v155_v39 = vcvt.s32.f32 %v148_v31 }
  0xc5   :  { %vm720_vm7 = vcmp.lt.s32.totalorder %v719_v36, 0 }
  0xc6   :  { %v153_v38 = vand.u32 2147483647, %v152_v35  ;;  %v298_v45 = vsel %vm720_vm7, 0, %v719_v36 }
  0xc7   :  { %v299_v40 = vsub.s32 32, %v298_v45  ;;  %v303_v51 = vsub.s32 4294967266, %v298_v45  ;;  %v300_v30 = vshll.u32 %v291_v21, %v298_v45  ;;  %v314_v21 = vsel %vm191_vm10, %v313_v10, %v968_v19 }
  0xc8   :  { %v156_v47 = vmul.f32 %v155_v39, %v153_v38  ;;  %v316_v28 = vsel %vm978_vm11, 0, %v314_v21 }
  0xc9   :  { %v301_v41 = vshrl.u32 %v283_v48, %v299_v40  ;;  %v304_v46 = vadd.s32 127, %v303_v51  ;;  %v642_v48 = vadd.s32 3, %v316_v28 }
  0xca   :  { %v157_v52 = vxor.u32 2147483648, %v156_v47 }
  0xcb   :  { %v302_v58 = vor.u32 %v301_v41, %v300_v30  ;;  %v305_v59 = vshll.u32 %v304_v46, 23  ;;  %v333_v30 = vand.u32 3, %v316_v28  ;;  %v643_v41 = vand.u32 3, %v642_v48 }
  0xcc   :  { %v158_v53 = vsel %vm37_vm8, %v157_v52, %v156_v47 }
  0xcd   :  { %v161_v42 = vsel %vm36_vm9, %v835_v7, %v158_v53  ;;  %v306_v34 = vor.u32 4788187, %v305_v59  ;;  %v309_v9 = vcvt.s32.f32 %v302_v58  ;;  %vm334_vm3 = vcmp.lt.s32.totalorder %v333_v30, 2 }
  0xce   :  { %v163_v61 = vmul.f32 %v161_v42, %v161_v42  ;;  %vm335_vm4 = vcmp.eq.s32.totalorder %v333_v30, 0  ;;  %vm644_vm5 = vcmp.lt.s32.totalorder %v643_v41, 2  ;;  %vm645_vm6 = vcmp.eq.s32.totalorder %v643_v41, 0 }
  0xcf   :  { %v307_v55 = vand.u32 2147483647, %v306_v34  ;;  %vm648_vm7 = vcmp.eq.s32.totalorder %v643_v41, 2  ;;  %vm338_vm8 = vcmp.eq.s32.totalorder %v333_v30, 2  ;;  %vm332_vm9 = vweird.f32 %v839_v14 }
  0xd0   :  { %v164_v62 = vmul.f32 -0.001358992, %v163_v61  ;;  %v171_v63 = vmul.f32 -0.00019511016, %v163_v61 }
  0xd1   :  { %v310_v2 = vmul.f32 %v309_v9, %v307_v55 }
  0xd2   :  { %v165_v43 = vadd.f32 0.041655596, %v164_v62  ;;  %v172_v0 = vadd.f32 0.008332121, %v171_v63 }
  0xd3   :  { %v311_v1 = vxor.u32 2147483648, %v310_v2 }
  0xd4   :  { %v166_v37 = vmul.f32 %v165_v43, %v163_v61  ;;  %v173_v57 = vmul.f32 %v172_v0, %v163_v61 }
  0xd5   :  { %v312_v5 = vsel %vm191_vm10, %v311_v1, %v310_v2  ;;  %vm661_vm10 = vcmask 130048  }
  0xd6   :  { %v167_v4 = vadd.f32 -0.4999988, %v166_v37  ;;  %v174_v54 = vadd.f32 -0.16666654, %v173_v57  ;;  %v315_v6 = vsel %vm978_vm11, %v839_v14, %v312_v5  ;;  %vm664_vm11 = vcmask 261120  }
  0xd7   :  { %v317_v8 = vmul.f32 %v315_v6, %v315_v6 }
  0xd8   :  { %v168_v11 = vmul.f32 %v167_v4, %v163_v61  ;;  %v175_v13 = vmul.f32 %v174_v54, %v163_v61 }
  0xd9   :  { %v318_v15 = vmul.f32 -0.001358992, %v317_v8  ;;  %v325_v56 = vmul.f32 -0.00019511016, %v317_v8 }
  0xda   :  { %v169_v18 = vadd.f32 1.0, %v168_v11  ;;  %v176_v20 = vadd.f32 1.0, %v175_v13 }
  0xdb   :  { %v319_v24 = vadd.f32 0.041655596, %v318_v15  ;;  %v326_v25 = vadd.f32 0.008332121, %v325_v56 }
  0xdc   :  { %v177_v22 = vmul.f32 %v176_v20, %v161_v42  ;;  %v185_v23 = vxor.u32 2147483648, %v169_v18 }
  0xdd   :  { %v320_v26 = vmul.f32 %v319_v24, %v317_v8  ;;  %v327_v29 = vmul.f32 %v326_v25, %v317_v8 }
  0xde   :  { %v182_v50 = vxor.u32 2147483648, %v177_v22  ;;  %v495_v27 = vsel %vm493_vm0, %v185_v23, %v177_v22  ;;  %v186_v19 = vsel %vm184_vm14, %v185_v23, %v177_v22 }
  0xdf   :  { %v321_v33 = vadd.f32 -0.4999988, %v320_v26  ;;  %v328_v38 = vadd.f32 -0.16666654, %v327_v29 }
  0xe0   :  { %v492_v31 = vsel %vm490_vm1, %v169_v18, %v182_v50  ;;  %v183_v32 = vsel %vm181_vm13, %v169_v18, %v182_v50 }
  0xe1   :  { %v496_v35 = vsel %vm489_vm15, %v492_v31, %v495_v27  ;;  %v187_v36 = vsel %vm180_vm12, %v183_v32, %v186_v19  ;;  %v322_v47 = vmul.f32 %v321_v33, %v317_v8  ;;  %v329_v40 = vmul.f32 %v328_v38, %v317_v8 }
  0xe2   :  { %v497_v39 = vsel %vm178_vm2, nan, %v496_v35  ;;  %v188_v45 = vsel %vm178_vm2, nan, %v187_v36 }
  0xe3   :  { %669 = vrot.lane.b32.xlu2 %v497_v39, %s800_s0  ;;  %655 = vrot.lane.b32.xlu1 %v188_v45, %s800_s0  ;;  %v323_v51 = vadd.f32 1.0, %v322_v47  ;;  %v330_v52 = vadd.f32 1.0, %v329_v40 }
  0xe5   :  { %v331_v46 = vmul.f32 %v330_v52, %v315_v6  ;;  %v339_v49 = vxor.u32 2147483648, %v323_v51 }
  0xe7   :  { %v336_v53 = vxor.u32 2147483648, %v331_v46  ;;  %v650_v58 = vsel %vm648_vm7, %v339_v49, %v331_v46  ;;  %v340_v42 = vsel %vm338_vm8, %v339_v49, %v331_v46 }
  0xe9   :  { %v647_v7 = vsel %vm645_vm6, %v323_v51, %v336_v53  ;;  %v337_v59 = vsel %vm335_vm4, %v323_v51, %v336_v53 }
  0xea   :  { %v651_v61 = vsel %vm644_vm5, %v647_v7, %v650_v58  ;;  %v341_v34 = vsel %vm334_vm3, %v337_v59, %v340_v42 }
  0xeb   :  { %v652_v60 = vsel %vm332_vm9, nan, %v651_v61  ;;  %v342_v62 = vsel %vm332_vm9, nan, %v341_v34 }
  0xec   :  { %671 = vrot.lane.b32.xlu2 %v652_v60, %s800_s0  ;;  %657 = vrot.lane.b32.xlu1 %v342_v62, %s800_s0 }
 0x13d   :  { %v670_v63 = vpop.permute.xlu2 %669 }
 0x13e   :  { %v675_v55 = vsel %vm661_vm10, %v497_v39, %v670_v63 }
 0x13f   :  { %677 = vst.msk [vmem:[#allocation4] sm:$0xff] %vm664_vm11, %v675_v55 }
 0x146   :  { %v672_v14 = vpop.permute.xlu2 %671 }
 0x147   :  { %v676_v9 = vsel %vm661_vm10, %v652_v60, %v672_v14 }
 0x148   :  { %678 = vst.msk [vmem:[#allocation4 + $0x8] sm:$0xff] %vm664_vm11, %v676_v9 }
 0x149   :  { %704 = dma.vmem_to_hbm [thread:$0]  %s697_s18, 256, %s699_s21, [#allocation5], %s802_s22, %s802_s22, %s803_s23  }
 0x155   :  { %v656_v44 = vpop.permute.xlu1 %655 }
 0x156   :  { %v662_v43 = vsel %vm661_vm10, %v188_v45, %v656_v44 }
 0x157   :  { %665 = vst.msk [vmem:[#allocation2] sm:$0xff] %vm664_vm11, %v662_v43 }
 0x15e   :  { %v658_v0 = vpop.permute.xlu1 %657 }
 0x15f   :  { %v663_v2 = vsel %vm661_vm10, %v342_v62, %v658_v0 }
 0x160   :  { %666 = vst.msk [vmem:[#allocation2 + $0x8] sm:$0xff] %vm664_vm11, %v663_v2 }
 0x161   :  { %691 = dma.vmem_to_hbm [thread:$0]  %s684_s25, 256, %s686_s3, [#allocation3], %s802_s22, %s802_s22, %s803_s23  }
 0x162   :  { %789 = dma.done.wait [#allocation3], 256  }
 0x163   :  { %790 = vsyncadd [#allocation3], 4294967040 }
 0x164   :  { %791 = dma.done.wait [#allocation5], 256  }
 0x165   :  { %792 = vsyncadd [#allocation5], 4294967040 }
 0x166   :  { %713 = vsyncpa [#allocation3], 1 }
 0x167   :  { %714 = vsyncpa [#allocation5], 1 }

</bundles_post_ra>
